<compile_context>
chip_gen: v7x
topology: tpu7x:2x2x1
jax: 0.10.0
libtpu: 0.0.40
codegen_flags: <defaults>
</compile_context>

<pallas_src>
import math

import jax
import jax.numpy as jnp
from jax.experimental import pallas as pl
from jax.experimental.pallas import tpu as pltpu

HIDDEN = 256
PACK = 128                                   # lane-dense packed output width
CONST_W = 4 * PACK                           # const-slab lane width (== 2*HIDDEN)
LOG_SQRT_2PI = 0.5 * math.log(2.0 * math.pi)


def _round_up(x, m):
    return (x + m - 1) // m * m


def _make_kernel(num_actions: int, use_given_action: bool):
    A = num_actions

    def kernel(state_ref, noise_ref,
               w1_ref, w2a_ref, w3a_ref, w2c_ref,    # bf16 weight slabs
               const_ref,                            # f32 [8, 512] const slab
               out_ref):
        x = state_ref[...]                                            # [TB, S] f32

        # ---- fused first layer (actor | critic share input x), bf16 MXU ----
        b1 = const_ref[0:1, :]                                        # [1, 512]
        h = jnp.dot(x.astype(jnp.bfloat16), w1_ref[...],
                    preferred_element_type=jnp.float32) + b1
        h = jnp.maximum(h, 0.0)                                       # [TB, 512] f32
        ha = h[:, :HIDDEN]                                            # 128-aligned slices
        hc = h[:, HIDDEN:]

        # ---- actor tower ----------------------------------------------------
        b2a = const_ref[1:2, 0:HIDDEN]
        ha = jnp.dot(ha.astype(jnp.bfloat16), w2a_ref[...],
                     preferred_element_type=jnp.float32) + b2a
        ha = jnp.maximum(ha, 0.0)
        # head weight pre-padded to [HIDDEN, PACK] (cols >= A are zero), head
        # bias pre-padded with zeros, so `mean` is lane-dense and exactly 0 in
        # the padded lanes (tanh(0) == 0, also exact in bf16).
        b3a = const_ref[2:3, 0:PACK]
        mean = jnp.tanh(jnp.dot(ha.astype(jnp.bfloat16), w3a_ref[...],
                                preferred_element_type=jnp.float32) + b3a)  # [TB, PACK] f32

        noise = noise_ref[...]                                        # [TB, PACK] f32; 0 in lanes >= A
        if use_given_action:
            act = noise                                               # given action (pre-padded)
        else:
            std = const_ref[2:3, 3 * PACK:4 * PACK]                   # [1, PACK]
            act = mean + std * noise                                  # reparameterized sample

        # Pad invariants (do not break when repacking changes):
        #   mean[:, A:] == 0, noise[:, A:] == 0  => diff[:, A:] == 0
        #   c1[:, A:] == 0, nhiv[:, A:] == 0     => padded lanes add exactly 0,
        # so no where-mask is needed before the lane reduction.
        diff = act - mean
        c1 = const_ref[2:3, PACK:2 * PACK]                            # -(log(std)+log(sqrt(2pi)))
        nhiv = const_ref[2:3, 2 * PACK:3 * PACK]                      # -0.5 / std^2
        logp = jnp.sum(diff * diff * nhiv + c1, axis=1, keepdims=True)  # [TB, 1]

        # ---- critic tower ----------------------------------------------------
        b2c = const_ref[1:2, HIDDEN:2 * HIDDEN]
        hc = jnp.dot(hc.astype(jnp.bfloat16), w2c_ref[...],
                     preferred_element_type=jnp.float32) + b2c
        hc = jnp.maximum(hc, 0.0)
        # N=1 head in f32: elementwise mul + lane reduction instead of a
        # 1-column MXU matmul; the head bias is folded into the output bias row.
        w3c = const_ref[3:4, 0:HIDDEN]                                # [1, HIDDEN]
        v = jnp.sum(hc * w3c, axis=1, keepdims=True)                  # [TB, 1]

        # ---- lane-dense packed output: [ action(A) | logp | value | 0... ] ---
        lane = jax.lax.broadcasted_iota(jnp.int32, (act.shape[0], PACK), 1)
        out = jnp.where(lane < A, act, 0.0)
        out = out + jnp.where(lane == A, logp, 0.0)
        out = out + jnp.where(lane == A + 1, v, 0.0)
        out_ref[...] = out + const_ref[3:4, 2 * PACK:3 * PACK]        # adds b3c at lane A+1

    return kernel


def prepare_params(params):
    """One-time host-side repacking (do this OUTSIDE the step loop)."""
    A = params["std"].shape[1]
    S = params["w1a"].shape[0]
    assert A + 2 <= PACK, "packed output assumes num_actions <= 126"

    # bf16 weight slabs for the MXU (accumulation stays f32 in-kernel).
    w1 = jnp.concatenate([params["w1a"], params["w1c"]], axis=1).astype(jnp.bfloat16)
    w2a = params["w2a"].astype(jnp.bfloat16)
    w2c = params["w2c"].astype(jnp.bfloat16)
    w3a = (jnp.zeros((HIDDEN, PACK), jnp.float32)
           .at[:, :A].set(params["w3a"]).astype(jnp.bfloat16))

    std_vec = params["std"][0]                                        # [A]
    c1 = -(jnp.log(std_vec) + LOG_SQRT_2PI)                           # [A]
    nhiv = -0.5 / (std_vec * std_vec)                                 # [A]

    # Single lane-dense const slab [8, 512] (one resident DMA):
    #  row 0: b1 fused (512)
    #  row 1: [ b2a (256) | b2c (256) ]
    #  row 2: [ b3a pad0 (128) | c1 pad0 (128) | nhiv pad0 (128) | std pad1 (128) ]
    #  row 3: [ w3c row (256) | out-bias: b3c at lane 2*PACK+A+1 | zeros ]
    const = jnp.zeros((8, CONST_W), jnp.float32)
    b1 = jnp.concatenate([params["b1a"], params["b1c"]], axis=1)[0]   # [512]
    const = const.at[0, :2 * HIDDEN].set(b1)
    const = const.at[1, :HIDDEN].set(params["b2a"][0])
    const = const.at[1, HIDDEN:2 * HIDDEN].set(params["b2c"][0])
    const = const.at[2, :A].set(params["b3a"][0])
    const = const.at[2, PACK:PACK + A].set(c1)
    const = const.at[2, 2 * PACK:2 * PACK + A].set(nhiv)
    const = const.at[2, 3 * PACK:3 * PACK + A].set(std_vec)
    const = const.at[2, 3 * PACK + A:4 * PACK].set(1.0)               # std pad (unused, safe)
    const = const.at[3, :HIDDEN].set(params["w3c"][:, 0])
    const = const.at[3, 2 * PACK + A + 1].set(params["b3c"][0, 0])    # critic bias -> value lane

    return dict(A=A, S=S, w1=w1, w2a=w2a, w3a=w3a, w2c=w2c, const=const)


def agent_forward(state, prep, eps, action=None):
    """Pallas equivalent of AgentNetwork.forward(state, action)."""
    B, S = state.shape
    A = prep["A"]
    assert S == prep["S"]
    use_given = action is not None

    # ---- batch tiling ------------------------------------------------------
    Bp8 = _round_up(B, 8)
    TB = min(512, Bp8)
    if Bp8 >= 16 and Bp8 // TB < 2:
        # guarantee >= 2 grid steps so the "parallel" axis can use both v7x cores
        TB = _round_up((Bp8 + 1) // 2, 8)
    Bp = _round_up(B, TB)
    grid = (Bp // TB,)

    state_p = state.astype(jnp.float32)
    if Bp != B:
        state_p = jnp.pad(state_p, ((0, Bp - B), (0, 0)))

    # noise slot carries eps (sample path) or the given action (eval path),
    # padded to the lane-dense PACK width with zeros.
    src = (action if use_given else eps).astype(jnp.float32)
    noise_p = jnp.zeros((Bp, PACK), jnp.float32).at[:B, :A].set(src)

    resident = lambda i: (0, 0)          # weights stay VMEM-resident across the grid
    tiled = lambda i: (i, 0)             # activations / outputs tiled by batch

    in_specs = [
        pl.BlockSpec((TB, S), tiled),                 # state
        pl.BlockSpec((TB, PACK), tiled),              # noise / given action (packed)
        pl.BlockSpec((S, 2 * HIDDEN), resident),      # w1 fused (bf16)
        pl.BlockSpec((HIDDEN, HIDDEN), resident),     # w2a (bf16)
        pl.BlockSpec((HIDDEN, PACK), resident),       # w3a padded head (bf16)
        pl.BlockSpec((HIDDEN, HIDDEN), resident),     # w2c (bf16)
        pl.BlockSpec((8, CONST_W), resident),         # const slab (f32)
    ]
    out_specs = pl.BlockSpec((TB, PACK), tiled)

    weight_bytes = (2 * (prep["w1"].size + prep["w2a"].size + prep["w3a"].size
                         + prep["w2c"].size)
                    + 4 * prep["const"].size)
    cost = pl.CostEstimate(
        flops=int(2 * Bp * (S * 2 * HIDDEN + 2 * HIDDEN * HIDDEN
                            + HIDDEN * PACK + HIDDEN)),
        transcendentals=int(Bp * PACK),
        bytes_accessed=int(weight_bytes + 4 * Bp * (S + 2 * PACK)),
    )

    packed = pl.pallas_call(
        _make_kernel(A, use_given),
        out_shape=jax.ShapeDtypeStruct((Bp, PACK), jnp.float32),
        grid=grid,
        in_specs=in_specs,
        out_specs=out_specs,
        compiler_params=pltpu.CompilerParams(dimension_semantics=("parallel",)),
        cost_estimate=cost,
    )(state_p, noise_p, prep["w1"], prep["w2a"], prep["w3a"], prep["w2c"],
      prep["const"])

    packed = packed[:B]
    action_out = packed[:, :A]
    log_prob = packed[:, A:A + 1]
    value = packed[:, A + 1:A + 2]
    return action_out, log_prob, value


def init_params(key, num_states, num_actions):
    """Linear weights ~ U(-1/sqrt(fan_in), 1/sqrt(fan_in)); std = ones(1, A),
    mirroring the PyTorch module."""
    def linear(k, fan_in, fan_out):
        bound = 1.0 / math.sqrt(fan_in)
        kw, kb = jax.random.split(k)
        w = jax.random.uniform(kw, (fan_in, fan_out), jnp.float32, -bound, bound)
        b = jax.random.uniform(kb, (1, fan_out), jnp.float32, -bound, bound)
        return w, b

    keys = jax.random.split(key, 6)
    w1a, b1a = linear(keys[0], num_states, HIDDEN)
    w2a, b2a = linear(keys[1], HIDDEN, HIDDEN)
    w3a, b3a = linear(keys[2], HIDDEN, num_actions)
    w1c, b1c = linear(keys[3], num_states, HIDDEN)
    w2c, b2c = linear(keys[4], HIDDEN, HIDDEN)
    w3c, b3c = linear(keys[5], HIDDEN, 1)
    std = jnp.ones((1, num_actions), jnp.float32)
    return dict(w1a=w1a, b1a=b1a, w2a=w2a, b2a=b2a, w3a=w3a, b3a=b3a,
                w1c=w1c, b1c=b1c, w2c=w2c, b2c=b2c, w3c=w3c, b3c=b3c,
                std=std)


def reference_forward(state, params, eps, action=None):
    """Pure-JAX f32 reference mirroring the PyTorch semantics."""
    def mlp(x, w1, b1, w2, b2, w3, b3):
        h = jnp.maximum(x @ w1 + b1, 0.0)
        h = jnp.maximum(h @ w2 + b2, 0.0)
        return h @ w3 + b3

    a = jnp.tanh(mlp(state, params["w1a"], params["b1a"], params["w2a"],
                     params["b2a"], params["w3a"], params["b3a"]))
    std = params["std"]
    if action is None:
        action = a + std * eps
    logp = -((action - a) ** 2) / (2.0 * std * std) - jnp.log(std) - LOG_SQRT_2PI
    logp = jnp.sum(logp, axis=1, keepdims=True)
    v = mlp(state, params["w1c"], params["b1c"], params["w2c"],
            params["b2c"], params["w3c"], params["b3c"])
    return action, logp, v


if __name__ == "__main__":
    num_states, num_actions, batch = 16, 8, 8

    key = jax.random.PRNGKey(0)
    k_params, k_state, k_eps, k_act = jax.random.split(key, 4)

    params = init_params(k_params, num_states, num_actions)
    prep = prepare_params(params)                       # one-time repacking
    state = jax.random.normal(k_state, (batch, num_states), jnp.float32)
    eps = jax.random.normal(k_eps, (batch, num_actions), jnp.float32)

    # Path 1: action=None (reparameterized sample from Normal(mean, std))
    action, log_prob, value = agent_forward(state, prep, eps, action=None)
    jax.block_until_ready((action, log_prob, value))

    ref_action, ref_logp, ref_value = reference_forward(state, params, eps, None)
    # bf16 MXU operands -> tolerances loosened vs. the f32 reference where the
    # quantity depends on the matmul outputs; log_prob on the sample path is
    # analytically independent of `mean` so it stays tight.
    assert jnp.allclose(action, ref_action, atol=3e-2)
    assert jnp.allclose(log_prob, ref_logp, atol=1e-3)
    assert jnp.allclose(value, ref_value, atol=2e-2)

    # Path 2: a given action -> log_prob of that action
    given = jax.random.normal(k_act, (batch, num_actions), jnp.float32)
    action2, log_prob2, value2 = agent_forward(state, prep, eps, action=given)
    jax.block_until_ready((action2, log_prob2, value2))

    ref_a2, ref_lp2, ref_v2 = reference_forward(state, params, eps, given)
    assert jnp.allclose(action2, given, atol=1e-6)      # pure passthrough, stays exact
    assert jnp.allclose(log_prob2, ref_lp2, atol=1e-1)
    assert jnp.allclose(value2, ref_v2, atol=2e-2)

    print("KERNEL_OK")
</pallas_src>

<mosaic_0001>
module attributes {stable_mosaic.version = 11 : i64} {
  func.func @kernel(%arg0: i32, %arg1: memref<8x16xf32, #tpu.memory_space<vmem>>, %arg2: memref<8x128xf32, #tpu.memory_space<vmem>>, %arg3: memref<16x512xbf16, #tpu.memory_space<vmem>>, %arg4: memref<256x256xbf16, #tpu.memory_space<vmem>>, %arg5: memref<256x128xbf16, #tpu.memory_space<vmem>>, %arg6: memref<256x256xbf16, #tpu.memory_space<vmem>>, %arg7: memref<8x512xf32, #tpu.memory_space<vmem>>, %arg8: memref<8x128xf32, #tpu.memory_space<vmem>>) attributes {dimension_semantics = [#tpu.dimension_semantics<parallel>], iteration_bounds = array<i64: 1>, scalar_prefetch = 0 : i64, scratch_operands = 0 : i64, tpu.core_type = #tpu.core_type<tc>, window_params = [{transform_indices = @transform_0, window_bounds = array<i64: 8, 16>}, {transform_indices = @transform_1, window_bounds = array<i64: 8, 128>}, {pipeline_mode = #tpu.pipeline_mode<synchronous>, transform_indices = @transform_2, window_bounds = array<i64: 16, 512>}, {pipeline_mode = #tpu.pipeline_mode<synchronous>, transform_indices = @transform_3, window_bounds = array<i64: 256, 256>}, {pipeline_mode = #tpu.pipeline_mode<synchronous>, transform_indices = @transform_4, window_bounds = array<i64: 256, 128>}, {pipeline_mode = #tpu.pipeline_mode<synchronous>, transform_indices = @transform_5, window_bounds = array<i64: 256, 256>}, {pipeline_mode = #tpu.pipeline_mode<synchronous>, transform_indices = @transform_6, window_bounds = array<i64: 8, 512>}, {transform_indices = @transform_7, window_bounds = array<i64: 8, 128>}]} {
    %c0 = arith.constant 0 : index
    %c0_0 = arith.constant 0 : index
    %0 = vector.load %arg1[%c0, %c0_0] : memref<8x16xf32, #tpu.memory_space<vmem>>, vector<8x16xf32>
    %c0_1 = arith.constant 0 : index
    %c0_2 = arith.constant 0 : index
    %1 = vector.load %arg7[%c0_1, %c0_2] : memref<8x512xf32, #tpu.memory_space<vmem>>, vector<1x512xf32>
    %2 = arith.truncf %0 : vector<8x16xf32> to vector<8x16xbf16>
    %c0_3 = arith.constant 0 : index
    %c0_4 = arith.constant 0 : index
    %3 = vector.load %arg3[%c0_3, %c0_4] : memref<16x512xbf16, #tpu.memory_space<vmem>>, vector<16x512xbf16>
    %cst = arith.constant dense<0.000000e+00> : vector<8x512xf32>
    %4 = tpu.matmul %2, %3, %cst {dimension_numbers = #tpu.dot_dimension_numbers<[1], [0], [0], [1], [0, 0, 1, 1], [], []>} : vector<8x16xbf16>, vector<16x512xbf16>, vector<8x512xf32> -> vector<8x512xf32>
    %5 = vector.broadcast %1 : vector<1x512xf32> to vector<8x512xf32>
    %6 = arith.addf %4, %5 : vector<8x512xf32>
    %cst_5 = arith.constant 0.000000e+00 : f32
    %7 = vector.broadcast %cst_5 : f32 to vector<8x512xf32>
    %8 = arith.maximumf %6, %7 : vector<8x512xf32>
    %9 = vector.extract_strided_slice %8 {offsets = [0, 0], sizes = [8, 256], strides = [1, 1]} : vector<8x512xf32> to vector<8x256xf32>
    %10 = vector.extract_strided_slice %8 {offsets = [0, 256], sizes = [8, 256], strides = [1, 1]} : vector<8x512xf32> to vector<8x256xf32>
    %c1 = arith.constant 1 : index
    %c0_6 = arith.constant 0 : index
    %11 = vector.load %arg7[%c1, %c0_6] : memref<8x512xf32, #tpu.memory_space<vmem>>, vector<1x256xf32>
    %12 = arith.truncf %9 : vector<8x256xf32> to vector<8x256xbf16>
    %c0_7 = arith.constant 0 : index
    %c0_8 = arith.constant 0 : index
    %13 = vector.load %arg4[%c0_7, %c0_8] : memref<256x256xbf16, #tpu.memory_space<vmem>>, vector<256x256xbf16>
    %cst_9 = arith.constant dense<0.000000e+00> : vector<8x256xf32>
    %14 = tpu.matmul %12, %13, %cst_9 {dimension_numbers = #tpu.dot_dimension_numbers<[1], [0], [0], [1], [0, 0, 1, 1], [], []>} : vector<8x256xbf16>, vector<256x256xbf16>, vector<8x256xf32> -> vector<8x256xf32>
    %15 = vector.broadcast %11 : vector<1x256xf32> to vector<8x256xf32>
    %16 = arith.addf %14, %15 : vector<8x256xf32>
    %cst_10 = arith.constant 0.000000e+00 : f32
    %17 = vector.broadcast %cst_10 : f32 to vector<8x256xf32>
    %18 = arith.maximumf %16, %17 : vector<8x256xf32>
    %c2 = arith.constant 2 : index
    %c0_11 = arith.constant 0 : index
    %19 = vector.load %arg7[%c2, %c0_11] : memref<8x512xf32, #tpu.memory_space<vmem>>, vector<1x128xf32>
    %20 = arith.truncf %18 : vector<8x256xf32> to vector<8x256xbf16>
    %c0_12 = arith.constant 0 : index
    %c0_13 = arith.constant 0 : index
    %21 = vector.load %arg5[%c0_12, %c0_13] : memref<256x128xbf16, #tpu.memory_space<vmem>>, vector<256x128xbf16>
    %cst_14 = arith.constant dense<0.000000e+00> : vector<8x128xf32>
    %22 = tpu.matmul %20, %21, %cst_14 {dimension_numbers = #tpu.dot_dimension_numbers<[1], [0], [0], [1], [0, 0, 1, 1], [], []>} : vector<8x256xbf16>, vector<256x128xbf16>, vector<8x128xf32> -> vector<8x128xf32>
    %23 = vector.broadcast %19 : vector<1x128xf32> to vector<8x128xf32>
    %24 = arith.addf %22, %23 : vector<8x128xf32>
    %25 = math.tanh %24 : vector<8x128xf32>
    %c0_15 = arith.constant 0 : index
    %c0_16 = arith.constant 0 : index
    %26 = vector.load %arg2[%c0_15, %c0_16] : memref<8x128xf32, #tpu.memory_space<vmem>>, vector<8x128xf32>
    %c2_17 = arith.constant 2 : index
    %c384 = arith.constant 384 : index
    %27 = vector.load %arg7[%c2_17, %c384] : memref<8x512xf32, #tpu.memory_space<vmem>>, vector<1x128xf32>
    %28 = vector.broadcast %27 : vector<1x128xf32> to vector<8x128xf32>
    %29 = arith.mulf %28, %26 : vector<8x128xf32>
    %30 = arith.addf %25, %29 : vector<8x128xf32>
    %31 = arith.subf %30, %25 : vector<8x128xf32>
    %c2_18 = arith.constant 2 : index
    %c128 = arith.constant 128 : index
    %32 = vector.load %arg7[%c2_18, %c128] : memref<8x512xf32, #tpu.memory_space<vmem>>, vector<1x128xf32>
    %c2_19 = arith.constant 2 : index
    %c256 = arith.constant 256 : index
    %33 = vector.load %arg7[%c2_19, %c256] : memref<8x512xf32, #tpu.memory_space<vmem>>, vector<1x128xf32>
    %34 = arith.mulf %31, %31 : vector<8x128xf32>
    %35 = vector.broadcast %33 : vector<1x128xf32> to vector<8x128xf32>
    %36 = arith.mulf %34, %35 : vector<8x128xf32>
    %37 = vector.broadcast %32 : vector<1x128xf32> to vector<8x128xf32>
    %38 = arith.addf %36, %37 : vector<8x128xf32>
    %cst_20 = arith.constant dense<0.000000e+00> : vector<8xf32>
    %39 = vector.multi_reduction <add>, %38, %cst_20 [1] : vector<8x128xf32> to vector<8xf32>
    %40 = vector.shape_cast %39 : vector<8xf32> to vector<8x1xf32>
    %c1_21 = arith.constant 1 : index
    %c256_22 = arith.constant 256 : index
    %41 = vector.load %arg7[%c1_21, %c256_22] : memref<8x512xf32, #tpu.memory_space<vmem>>, vector<1x256xf32>
    %42 = arith.truncf %10 : vector<8x256xf32> to vector<8x256xbf16>
    %c0_23 = arith.constant 0 : index
    %c0_24 = arith.constant 0 : index
    %43 = vector.load %arg6[%c0_23, %c0_24] : memref<256x256xbf16, #tpu.memory_space<vmem>>, vector<256x256xbf16>
    %cst_25 = arith.constant dense<0.000000e+00> : vector<8x256xf32>
    %44 = tpu.matmul %42, %43, %cst_25 {dimension_numbers = #tpu.dot_dimension_numbers<[1], [0], [0], [1], [0, 0, 1, 1], [], []>} : vector<8x256xbf16>, vector<256x256xbf16>, vector<8x256xf32> -> vector<8x256xf32>
    %45 = vector.broadcast %41 : vector<1x256xf32> to vector<8x256xf32>
    %46 = arith.addf %44, %45 : vector<8x256xf32>
    %cst_26 = arith.constant 0.000000e+00 : f32
    %47 = vector.broadcast %cst_26 : f32 to vector<8x256xf32>
    %48 = arith.maximumf %46, %47 : vector<8x256xf32>
    %c3 = arith.constant 3 : index
    %c0_27 = arith.constant 0 : index
    %49 = vector.load %arg7[%c3, %c0_27] : memref<8x512xf32, #tpu.memory_space<vmem>>, vector<1x256xf32>
    %50 = vector.broadcast %49 : vector<1x256xf32> to vector<8x256xf32>
    %51 = arith.mulf %48, %50 : vector<8x256xf32>
    %cst_28 = arith.constant dense<0.000000e+00> : vector<8xf32>
    %52 = vector.multi_reduction <add>, %51, %cst_28 [1] : vector<8x256xf32> to vector<8xf32>
    %53 = vector.shape_cast %52 : vector<8xf32> to vector<8x1xf32>
    %54 = tpu.iota {dimensions = array<i32: 1>} : vector<8x128xi32>
    %c8_i32 = arith.constant 8 : i32
    %55 = vector.broadcast %c8_i32 : i32 to vector<8x128xi32>
    %56 = arith.cmpi slt, %54, %55 : vector<8x128xi32>
    %cst_29 = arith.constant 0.000000e+00 : f32
    %57 = vector.broadcast %cst_29 : f32 to vector<8x128xf32>
    %58 = arith.select %56, %30, %57 : vector<8x128xi1>, vector<8x128xf32>
    %c8_i32_30 = arith.constant 8 : i32
    %59 = vector.broadcast %c8_i32_30 : i32 to vector<8x128xi32>
    %60 = arith.cmpi eq, %54, %59 : vector<8x128xi32>
    %cst_31 = arith.constant 0.000000e+00 : f32
    %61 = vector.shape_cast %40 : vector<8x1xf32> to vector<8x1xf32>
    %62 = vector.broadcast %61 : vector<8x1xf32> to vector<8x128xf32>
    %63 = vector.broadcast %cst_31 : f32 to vector<8x128xf32>
    %64 = arith.select %60, %62, %63 : vector<8x128xi1>, vector<8x128xf32>
    %65 = arith.addf %58, %64 : vector<8x128xf32>
    %c9_i32 = arith.constant 9 : i32
    %66 = vector.broadcast %c9_i32 : i32 to vector<8x128xi32>
    %67 = arith.cmpi eq, %54, %66 : vector<8x128xi32>
    %cst_32 = arith.constant 0.000000e+00 : f32
    %68 = vector.shape_cast %53 : vector<8x1xf32> to vector<8x1xf32>
    %69 = vector.broadcast %68 : vector<8x1xf32> to vector<8x128xf32>
    %70 = vector.broadcast %cst_32 : f32 to vector<8x128xf32>
    %71 = arith.select %67, %69, %70 : vector<8x128xi1>, vector<8x128xf32>
    %72 = arith.addf %65, %71 : vector<8x128xf32>
    %c3_33 = arith.constant 3 : index
    %c256_34 = arith.constant 256 : index
    %73 = vector.load %arg7[%c3_33, %c256_34] : memref<8x512xf32, #tpu.memory_space<vmem>>, vector<1x128xf32>
    %74 = vector.broadcast %73 : vector<1x128xf32> to vector<8x128xf32>
    %75 = arith.addf %72, %74 : vector<8x128xf32>
    %c0_35 = arith.constant 0 : index
    %c0_36 = arith.constant 0 : index
    %76 = vector.load %arg8[%c0_35, %c0_36] : memref<8x128xf32, #tpu.memory_space<vmem>>, vector<8x128xf32>
    tpu.vector_store %arg8[%c0_35, %c0_36], %75 {strides = array<i32>} : memref<8x128xf32, #tpu.memory_space<vmem>>, vector<8x128xf32>,
    return
  }
  func.func @transform_0(%arg0: i32) -> (i32, i32) {
    %c0_i32 = arith.constant 0 : i32
    %c0_i32_0 = arith.constant 0 : i32
    return %arg0, %c0_i32 : i32, i32
  }
  func.func @transform_1(%arg0: i32) -> (i32, i32) {
    %c0_i32 = arith.constant 0 : i32
    %c0_i32_0 = arith.constant 0 : i32
    return %arg0, %c0_i32 : i32, i32
  }
  func.func @transform_2(%arg0: i32) -> (i32, i32) {
    %c0_i32 = arith.constant 0 : i32
    %c0_i32_0 = arith.constant 0 : i32
    %c0_i32_1 = arith.constant 0 : i32
    return %c0_i32, %c0_i32_0 : i32, i32
  }
  func.func @transform_3(%arg0: i32) -> (i32, i32) {
    %c0_i32 = arith.constant 0 : i32
    %c0_i32_0 = arith.constant 0 : i32
    %c0_i32_1 = arith.constant 0 : i32
    return %c0_i32, %c0_i32_0 : i32, i32
  }
  func.func @transform_4(%arg0: i32) -> (i32, i32) {
    %c0_i32 = arith.constant 0 : i32
    %c0_i32_0 = arith.constant 0 : i32
    %c0_i32_1 = arith.constant 0 : i32
    return %c0_i32, %c0_i32_0 : i32, i32
  }
  func.func @transform_5(%arg0: i32) -> (i32, i32) {
    %c0_i32 = arith.constant 0 : i32
    %c0_i32_0 = arith.constant 0 : i32
    %c0_i32_1 = arith.constant 0 : i32
    return %c0_i32, %c0_i32_0 : i32, i32
  }
  func.func @transform_6(%arg0: i32) -> (i32, i32) {
    %c0_i32 = arith.constant 0 : i32
    %c0_i32_0 = arith.constant 0 : i32
    %c0_i32_1 = arith.constant 0 : i32
    return %c0_i32, %c0_i32_0 : i32, i32
  }
  func.func @transform_7(%arg0: i32) -> (i32, i32) {
    %c0_i32 = arith.constant 0 : i32
    %c0_i32_0 = arith.constant 0 : i32
    return %arg0, %c0_i32 : i32, i32
  }
}

</mosaic_0001>

<bundles_post_ra>
// kernel: tpu_custom_call.1
= control target key start
LH: loop header
LB: loop body
LE: loop exit
PB: predicated region body
PF: predicated region fallthrough
CT: control target
= control target key end

     0   :  { %12 = vsyncpa [#allocation3], 0  ;;  %s1604_s0 = inlined_call_operand.hbm [shape: f32[8,16], index: 0, kind: input, shape index: {}]   ;;  %s1605_s1 = inlined_call_operand.hbm [shape: f32[8,128], index: 1, kind: input, shape index: {}]   ;;  %s1606_s2 = inlined_call_operand.hbm [shape: bf16[16,512], index: 2, kind: input, shape index: {}]   ;;  %s1607_s3 = inlined_call_operand.hbm [shape: bf16[256,256], index: 3, kind: input, shape index: {}]   ;;  %s1608_s4 = inlined_call_operand.hbm [shape: bf16[256,128], index: 4, kind: input, shape index: {}]   ;;  %s1609_s5 = inlined_call_operand.hbm [shape: bf16[256,256], index: 5, kind: input, shape index: {}]   ;;  %s1610_s6 = inlined_call_operand.hbm [shape: f32[8,512], index: 6, kind: input, shape index: {}]   ;;  %s1611_s7 = inlined_call_operand.hbm [shape: f32[8,128], index: 7, kind: output, shape index: {}]  }
   0x1   :  { %13 = vsyncpa [#allocation6], 0 }
   0x2   :  { %14 = vsyncpa [#allocation9], 0 }
   0x3   :  { %15 = vsyncpa [#allocation12], 0 }
   0x4   :  { %16 = vsyncpa [#allocation4], 0  ;;  %s1417_s24 = smov [#allocation5]   ;;  %s1418_s26 = smov [#allocation8]  }
   0x5   :  { %s33_s25 = sshll.u32 %s1417_s24, 4  ;;  %s54_s27 = sshll.u32 %s1418_s26, 4  ;;  %s34_s25 = int_to_ptr.vmem [resolvable:$true] %s33_s25  ;;  %s1472_s27 = int_to_ptr.vmem [resolvable:$true] %s54_s27 }
   0x6   :  { %s1231_s30 = scalar_lea.hbm %s1605_s1, 128 }
   0x7   :  { %p1232_p0 = scmp.ne.s32.totalorder %s1605_s1, %s1231_s30  ;;  %p1235_p1 = scmp.lt.u32.totalorder %s1231_s30, %s1605_s1 }
   0x9   :  { %p1237_p2 = pnand %p1235_p1, %p1232_p0 }
   0xb   :  { %1240 = shalt.err (!%p1237_p2)
}
   0xc   :  { %s1241_s12 = scalar_lea.vmem %s34_s25, 128  ;;  %p1246_p4 = scmp.lt.s32.totalorder %s34_s25, %s34_s25 }
   0xd   :  { %p1242_p3 = scmp.ne.s32.totalorder %s34_s25, %s1241_s12  ;;  %p1247_p5 = scmp.lt.s32.totalorder %s1241_s12, %s1241_s12 }
   0xf   :  { %p1248_p6 = por %p1247_p5, %p1246_p4 }
  0x11   :  { %p1249_p7 = pnand %p1248_p6, %p1242_p3 }
  0x13   :  { %1252 = shalt.err (!%p1249_p7)
}
  0x14   :  { %36 = dma.hbm_to_vmem [thread:$0]  %s1605_s1, 128, %s34_s25, [#allocation6]  }
  0x15   :  { %s1253_s17 = scalar_lea.hbm %s1607_s3, 4096 }
  0x16   :  { %p1254_p8 = scmp.ne.s32.totalorder %s1607_s3, %s1253_s17  ;;  %p1257_p9 = scmp.lt.u32.totalorder %s1253_s17, %s1607_s3 }
  0x18   :  { %p1259_p10 = pnand %p1257_p9, %p1254_p8 }
  0x1a   :  { %1262 = shalt.err (!%p1259_p10)
}
  0x1b   :  { %s1263_s22 = scalar_lea.vmem %s1472_s27, 4096  ;;  %p1268_p12 = scmp.lt.s32.totalorder %s1472_s27, %s1472_s27 }
  0x1c   :  { %p1264_p11 = scmp.ne.s32.totalorder %s1472_s27, %s1263_s22  ;;  %p1269_p13 = scmp.lt.s32.totalorder %s1263_s22, %s1263_s22 }
  0x1e   :  { %p1270_p0 = por %p1269_p13, %p1268_p12 }
  0x20   :  { %p1271_p1 = pnand %p1270_p0, %p1264_p11 }
  0x22   :  { %1274 = shalt.err (!%p1271_p1)
}
  0x23   :  { %s1419_s1 = smov 128   ;;  %s1420_s23 = smov 8  }
  0x24   :  { %60 = dma.hbm_to_vmem [thread:$0]  %s1607_s3, 4096, %s1472_s27, [#allocation9], %s1419_s1, %s1419_s1, %s1420_s23  }
  0x25   :  { %s1421_s26 = smov [#allocation11]   ;;  %s1422_s29 = smov [#allocation2]  }
  0x26   :  { %s78_s28 = sshll.u32 %s1421_s26, 4  ;;  %s23_s30 = sshll.u32 %s1422_s29, 4  ;;  %s79_s28 = int_to_ptr.vmem [resolvable:$true] %s78_s28  ;;  %s24_s30 = int_to_ptr.vmem [resolvable:$true] %s23_s30 }
  0x27   :  { %s1275_s10 = scalar_lea.hbm %s1609_s5, 4096 }
  0x28   :  { %p1276_p2 = scmp.ne.s32.totalorder %s1609_s5, %s1275_s10  ;;  %p1279_p3 = scmp.lt.u32.totalorder %s1275_s10, %s1609_s5 }
  0x2a   :  { %p1281_p4 = pnand %p1279_p3, %p1276_p2 }
  0x2c   :  { %1284 = shalt.err (!%p1281_p4)
}
  0x2d   :  { %s1285_s3 = scalar_lea.vmem %s79_s28, 4096  ;;  %p1290_p6 = scmp.lt.s32.totalorder %s79_s28, %s79_s28 }
  0x2e   :  { %p1286_p5 = scmp.ne.s32.totalorder %s79_s28, %s1285_s3  ;;  %p1291_p7 = scmp.lt.s32.totalorder %s1285_s3, %s1285_s3 }
  0x30   :  { %p1292_p8 = por %p1291_p7, %p1290_p6 }
  0x32   :  { %p1293_p9 = pnand %p1292_p8, %p1286_p5 }
  0x34   :  { %1296 = shalt.err (!%p1293_p9)
}
  0x35   :  { %84 = dma.hbm_to_vmem [thread:$0]  %s1609_s5, 4096, %s79_s28, [#allocation12], %s1419_s1, %s1419_s1, %s1420_s23  }
  0x36   :  { %s1297_s18 = scalar_lea.hbm %s1604_s0, 128 }
  0x37   :  { %p1298_p10 = scmp.ne.s32.totalorder %s1604_s0, %s1297_s18  ;;  %p1301_p11 = scmp.lt.u32.totalorder %s1297_s18, %s1604_s0 }
  0x39   :  { %p1303_p12 = pnand %p1301_p11, %p1298_p10 }
  0x3b   :  { %1306 = shalt.err (!%p1303_p12)
}
  0x3c   :  { %s1307_s24 = scalar_lea.vmem %s24_s30, 128  ;;  %p1312_p0 = scmp.lt.s32.totalorder %s24_s30, %s24_s30 }
  0x3d   :  { %p1308_p13 = scmp.ne.s32.totalorder %s24_s30, %s1307_s24  ;;  %p1313_p1 = scmp.lt.s32.totalorder %s1307_s24, %s1307_s24 }
  0x3f   :  { %p1314_p2 = por %p1313_p1, %p1312_p0 }
  0x41   :  { %p1315_p3 = pnand %p1314_p2, %p1308_p13 }
  0x43   :  { %1318 = shalt.err (!%p1315_p3)
}
  0x44   :  { %26 = dma.hbm_to_vmem [thread:$0]  %s1604_s0, 128, %s24_s30, [#allocation3]  }
  0x45   :  { %s1423_s23 = smov [#allocation7]   ;;  %s1319_s29 = scalar_lea.hbm %s1606_s2, 512 }
  0x46   :  { %s42_s25 = sshll.u32 %s1423_s23, 4  ;;  %p1320_p4 = scmp.ne.s32.totalorder %s1606_s2, %s1319_s29  ;;  %s43_s25 = int_to_ptr.vmem [resolvable:$true] %s42_s25 }
  0x47   :  { %p1323_p5 = scmp.lt.u32.totalorder %s1319_s29, %s1606_s2 }
  0x49   :  { %p1325_p6 = pnand %p1323_p5, %p1320_p4 }
  0x4b   :  { %1328 = shalt.err (!%p1325_p6)
}
  0x4c   :  { %s1329_s12 = scalar_lea.vmem %s43_s25, 512  ;;  %p1334_p8 = scmp.lt.s32.totalorder %s43_s25, %s43_s25 }
  0x4d   :  { %p1330_p7 = scmp.ne.s32.totalorder %s43_s25, %s1329_s12  ;;  %p1335_p9 = scmp.lt.s32.totalorder %s1329_s12, %s1329_s12 }
  0x4f   :  { %p1336_p10 = por %p1335_p9, %p1334_p8 }
  0x51   :  { %p1337_p11 = pnand %p1336_p10, %p1330_p7 }
  0x53   :  { %1340 = shalt.err (!%p1337_p11)
}
  0x54   :  { %s1424_s0 = smov 256   ;;  %s1425_s30 = smov 16  }
  0x55   :  { %48 = dma.hbm_to_vmem [thread:$0]  %s1606_s2, 512, %s43_s25, [#allocation6], %s1424_s0, %s1424_s0, %s1425_s30  }
  0x56   :  { %s1426_s3 = smov [#allocation10]   ;;  %s1341_s17 = scalar_lea.hbm %s1608_s4, 2048 }
  0x57   :  { %s66_s27 = sshll.u32 %s1426_s3, 4  ;;  %p1342_p12 = scmp.ne.s32.totalorder %s1608_s4, %s1341_s17  ;;  %s67_s27 = int_to_ptr.vmem [resolvable:$true] %s66_s27 }
  0x58   :  { %p1345_p13 = scmp.lt.u32.totalorder %s1341_s17, %s1608_s4 }
  0x5a   :  { %p1347_p0 = pnand %p1345_p13, %p1342_p12 }
  0x5c   :  { %1350 = shalt.err (!%p1347_p0)
}
  0x5d   :  { %s1351_s22 = scalar_lea.vmem %s67_s27, 2048  ;;  %p1356_p2 = scmp.lt.s32.totalorder %s67_s27, %s67_s27 }
  0x5e   :  { %p1352_p1 = scmp.ne.s32.totalorder %s67_s27, %s1351_s22  ;;  %p1357_p3 = scmp.lt.s32.totalorder %s1351_s22, %s1351_s22 }
  0x60   :  { %p1358_p4 = por %p1357_p3, %p1356_p2 }
  0x62   :  { %p1359_p5 = pnand %p1358_p4, %p1352_p1 }
  0x64   :  { %1362 = shalt.err (!%p1359_p5)
}
  0x65   :  { %s1427_s2 = smov 64   ;;  %s1428_s24 = smov 4  }
  0x66   :  { %72 = dma.hbm_to_vmem [thread:$0]  %s1608_s4, 2048, %s67_s27, [#allocation9], %s1427_s2, %s1427_s2, %s1428_s24  }
  0x67   :  { %s1429_s23 = smov [#allocation13]   ;;  %s1363_s29 = scalar_lea.hbm %s1610_s6, 512 }
  0x68   :  { %s91_s25 = sshll.u32 %s1429_s23, 4  ;;  %p1364_p6 = scmp.ne.s32.totalorder %s1610_s6, %s1363_s29  ;;  %s92_s25 = int_to_ptr.vmem [resolvable:$true] %s91_s25 }
  0x69   :  { %p1367_p7 = scmp.lt.u32.totalorder %s1363_s29, %s1610_s6 }
  0x6b   :  { %p1369_p8 = pnand %p1367_p7, %p1364_p6 }
  0x6d   :  { %1372 = shalt.err (!%p1369_p8)
}
  0x6e   :  { %s1373_s12 = scalar_lea.vmem %s92_s25, 512  ;;  %p1378_p10 = scmp.lt.s32.totalorder %s92_s25, %s92_s25 }
  0x6f   :  { %p1374_p9 = scmp.ne.s32.totalorder %s92_s25, %s1373_s12  ;;  %p1379_p11 = scmp.lt.s32.totalorder %s1373_s12, %s1373_s12 }
  0x71   :  { %p1380_p12 = por %p1379_p11, %p1378_p10 }
  0x73   :  { %p1381_p13 = pnand %p1380_p12, %p1374_p9 }
  0x75   :  { %1384 = shalt.err (!%p1381_p13)
}
  0x76   :  { %94 = dma.hbm_to_vmem [thread:$0]  %s1610_s6, 512, %s92_s25, [#allocation12]  }
  0x77   :  { %1407 = dma.done.wait [#allocation3], 128  }
  0x78   :  { %1408 = vsyncadd [#allocation3], 4294967168 }
  0x79   :  { %1409 = dma.done.wait [#allocation6], 640  }
  0x7a   :  { %1410 = vsyncadd [#allocation6], 4294966656 }
  0x7b   :  { %1411 = dma.done.wait [#allocation9], 6144  }
  0x7c   :  { %1412 = vsyncadd [#allocation9], 4294961152 }
  0x7d   :  { %1413 = dma.done.wait [#allocation12], 4608  }
  0x7e   :  { %1414 = vsyncadd [#allocation12], 4294962688  ;;  %v1430_v0 = vmov 0   ;;  %v1111_v1 = vld [vmem:[#allocation7 + $0x4] ss:$16 sps:$4 sm:$0xff]   ;;  %vm165_vm0 = vcmask 130048   ;;  %v125_v51 = vlaneseq }
  0x7f   :  { %201 = vmatprep.mubr.bf16.mxu0 %v1430_v0  ;;  %v1113_v2 = vld [vmem:[#allocation7] ss:$16 sps:$4 sm:$0xff]   ;;  %169 = vmatprep.subr.bf16.mxu0 %v1111_v1  ;;  %v1116_v5 = vld [vmem:[#allocation7 + $0xc] ss:$16 sps:$4 sm:$0xff]   ;;  %v1114_v6 = vld [vmem:[#allocation7 + $0x8] ss:$16 sps:$4 sm:$0xff]  }
  0x80   :  { %v117_v3 = vld [vmem:[#allocation2] sm:$0xff]  ;;  %170 = vmatpush1.bf16.msra.mxu0 %v1113_v2  ;;  %v1119_v7 = vld [vmem:[#allocation8 + $0x4] ss:$8 sps:$4 sm:$0xff]   ;;  %v1117_v8 = vld [vmem:[#allocation8] ss:$8 sps:$4 sm:$0xff]   ;;  %v1564_v52 = vshrl.u32 %v125_v51, 7 }
  0x81   :  { %v119_v4 = vpack.c.bf16 %v117_v3, %v117_v3  ;;  %210 = vmatprep.subr.bf16.mxu0 %v1116_v5  ;;  %v1122_v9 = vld [vmem:[#allocation8 + $0x14] ss:$8 sps:$4 sm:$0xff]   ;;  %v1120_v10 = vld [vmem:[#allocation8 + $0x10] ss:$8 sps:$4 sm:$0xff]   ;;  %v1125_v11 = vld [vmem:[#allocation8 + $0x24] ss:$8 sps:$4 sm:$0xff]  }
  0x82   :  { %v1123_v12 = vld [vmem:[#allocation8 + $0x20] ss:$8 sps:$4 sm:$0xff]   ;;  %v1128_v13 = vld [vmem:[#allocation8 + $0x34] ss:$8 sps:$4 sm:$0xff]   ;;  %v1126_v14 = vld [vmem:[#allocation8 + $0x30] ss:$8 sps:$4 sm:$0xff]  }
  0x83   :  { %992 = vmatmul.mubr.msk.bf16.vlgmr.msra.gmra.mrb[0].mxu0 %vm165_vm0, %v119_v4  ;;  %v1131_v15 = vld [vmem:[#allocation8 + $0x44] ss:$8 sps:$4 sm:$0xff]   ;;  %v1129_v16 = vld [vmem:[#allocation8 + $0x40] ss:$8 sps:$4 sm:$0xff]   ;;  %v1134_v17 = vld [vmem:[#allocation8 + $0x54] ss:$8 sps:$4 sm:$0xff]  }
  0x84   :  { %211 = vmatpush1.bf16.msra.mxu0 %v1114_v6  ;;  %242 = vmatprep.mubr.bf16.mxu0 %v1430_v0  ;;  %v1132_v18 = vld [vmem:[#allocation8 + $0x50] ss:$8 sps:$4 sm:$0xff]   ;;  %v1137_v19 = vld [vmem:[#allocation8 + $0x64] ss:$8 sps:$4 sm:$0xff]   ;;  %v1135_v20 = vld [vmem:[#allocation8 + $0x60] ss:$8 sps:$4 sm:$0xff]  }
  0x85   :  { %462 = vmatprep.subr.bf16.mxu0 %v1119_v7  ;;  %v1140_v21 = vld [vmem:[#allocation8 + $0x74] ss:$8 sps:$4 sm:$0xff]   ;;  %v1138_v22 = vld [vmem:[#allocation8 + $0x70] ss:$8 sps:$4 sm:$0xff]   ;;  %v1143_v23 = vld [vmem:[#allocation8 + $0x84] ss:$8 sps:$4 sm:$0xff]  }
  0x86   :  { %v1141_v24 = vld [vmem:[#allocation8 + $0x80] ss:$8 sps:$4 sm:$0xff]   ;;  %v1146_v25 = vld [vmem:[#allocation8 + $0x94] ss:$8 sps:$4 sm:$0xff]   ;;  %v1144_v26 = vld [vmem:[#allocation8 + $0x90] ss:$8 sps:$4 sm:$0xff]  }
  0x87   :  { %v1149_v27 = vld [vmem:[#allocation8 + $0xa4] ss:$8 sps:$4 sm:$0xff]   ;;  %v1147_v28 = vld [vmem:[#allocation8 + $0xa0] ss:$8 sps:$4 sm:$0xff]   ;;  %v1152_v29 = vld [vmem:[#allocation8 + $0xb4] ss:$8 sps:$4 sm:$0xff]  }
  0x88   :  { %v1150_v30 = vld [vmem:[#allocation8 + $0xb0] ss:$8 sps:$4 sm:$0xff]   ;;  %v1155_v31 = vld [vmem:[#allocation8 + $0xc4] ss:$8 sps:$4 sm:$0xff]   ;;  %v1153_v32 = vld [vmem:[#allocation8 + $0xc0] ss:$8 sps:$4 sm:$0xff]  }
  0x89   :  { %v1158_v33 = vld [vmem:[#allocation8 + $0xd4] ss:$8 sps:$4 sm:$0xff]   ;;  %v1156_v34 = vld [vmem:[#allocation8 + $0xd0] ss:$8 sps:$4 sm:$0xff]   ;;  %v1161_v35 = vld [vmem:[#allocation8 + $0xe4] ss:$8 sps:$4 sm:$0xff]  }
  0x8a   :  { %v1159_v36 = vld [vmem:[#allocation8 + $0xe0] ss:$8 sps:$4 sm:$0xff]   ;;  %v1164_v37 = vld [vmem:[#allocation8 + $0xf4] ss:$8 sps:$4 sm:$0xff]   ;;  %v1162_v38 = vld [vmem:[#allocation8 + $0xf0] ss:$8 sps:$4 sm:$0xff]  }
  0x8b   :  { %993 = vmatmul.mubr.msk.bf16.vlgmr.msra.gmra.mrb[4].mxu0 %vm165_vm0, %v119_v4  ;;  %v1165_v39 = vld [vmem:[#allocation10 + $0x40] sm:$0xff]   ;;  %v1167_v41 = vld [vmem:[#allocation10 + $0x48] sm:$0xff]   ;;  %v1169_v43 = vld [vmem:[#allocation10 + $0x50] sm:$0xff]   ;;  %v1567_v53 = vsub.s32 0, %v1564_v52  ;;  %v1572_v55 = vsub.s32 1, %v1564_v52  ;;  %s1431_s6 = smov [#allocation14]  }
  0x8c   :  { %463 = vmatpush1.bf16.msra.mxu0 %v1117_v8  ;;  %v1166_v40 = vld [vmem:[#allocation10] sm:$0xff]   ;;  %1074 = vmatprep.subr.bf16.mxu1 %v1165_v39  ;;  %v1168_v42 = vld [vmem:[#allocation10 + $0x8] sm:$0xff]   ;;  %v1170_v44 = vld [vmem:[#allocation10 + $0x10] sm:$0xff]   ;;  %s976_s30 = sshll.u32 %s1431_s6, 4  ;;  %s977_s30 = int_to_ptr.vmem [resolvable:$true] %s976_s30 }
  0x8d   :  { %464 = vmatprep.subr.bf16.mxu0 %v1122_v9  ;;  %1075 = vmatpush3.bf16.msra.mxu1 %v1166_v40  ;;  %v1171_v45 = vld [vmem:[#allocation10 + $0x58] sm:$0xff]   ;;  %v1173_v47 = vld [vmem:[#allocation10 + $0x60] sm:$0xff]   ;;  %v1175_v49 = vld [vmem:[#allocation10 + $0x68] sm:$0xff]   ;;  %s1385_s13 = scalar_lea.vmem %s977_s30, 128  ;;  %p1390_p1 = scmp.lt.s32.totalorder %s977_s30, %s977_s30 }
  0x8e   :  { %1076 = vmatprep.subr.bf16.mxu1 %v1167_v41  ;;  %v1172_v46 = vld [vmem:[#allocation10 + $0x18] sm:$0xff]   ;;  %v1174_v48 = vld [vmem:[#allocation10 + $0x20] sm:$0xff]   ;;  %v1176_v50 = vld [vmem:[#allocation10 + $0x28] sm:$0xff]   ;;  %p1386_p0 = scmp.ne.s32.totalorder %s977_s30, %s1385_s13  ;;  %p1391_p2 = scmp.lt.s32.totalorder %s1385_s13, %s1385_s13 }
  0x8f   :  { %v1569_v54 = vld [vmem:[#allocation13] ss:$8 sm:$0xf]  ;;  %v1198_v40 = vld [vmem:[#allocation11 + $0x54] ss:$8 sps:$4 sm:$0xff]  }
  0x90   :  { %465 = vmatpush1.bf16.msra.mxu0 %v1120_v10  ;;  %v128_v56 = vrot.slane %v1569_v54, %v1567_v53  ;;  %v132_v57 = vrot.slane %v1569_v54, %v1572_v55  ;;  %v1177_v8 = vld [vmem:[#allocation10 + $0x70] sm:$0xff]   ;;  %v1179_v10 = vld [vmem:[#allocation10 + $0x78] sm:$0xff]   ;;  %v1193_v39 = vld [vmem:[#allocation11 + $0x40] ss:$8 sps:$4 sm:$0xff]   ;;  %p1392_p3 = por %p1391_p2, %p1390_p1 }
  0x91   :  { %466 = vmatprep.subr.bf16.mxu0 %v1125_v11  ;;  %1077 = vmatpush3.bf16.msra.mxu1 %v1168_v42  ;;  %v1178_v9 = vld [vmem:[#allocation10 + $0x30] sm:$0xff]   ;;  %v1180_v11 = vld [vmem:[#allocation10 + $0x38] sm:$0xff]   ;;  %v1201_v42 = vld [vmem:[#allocation11 + $0x64] ss:$8 sps:$4 sm:$0xff]  }
  0x92   :  { %1078 = vmatprep.subr.bf16.mxu1 %v1169_v43  ;;  %v1196_v41 = vld [vmem:[#allocation11 + $0x50] ss:$8 sps:$4 sm:$0xff]   ;;  %v1199_v43 = vld [vmem:[#allocation11 + $0x60] ss:$8 sps:$4 sm:$0xff]   ;;  %p1393_p4 = pnand %p1392_p3, %p1386_p0 }
  0x94   :  { %467 = vmatpush1.bf16.msra.mxu0 %v1123_v12  ;;  %v1183_v12 = vld [vmem:[#allocation11 + $0x4] ss:$8 sps:$4 sm:$0xff]  }
  0x95   :  { %468 = vmatprep.subr.bf16.mxu0 %v1128_v13  ;;  %1079 = vmatpush3.bf16.msra.mxu1 %v1170_v44  ;;  %v139_v13 = vsub.s32 3, %v1564_v52  ;;  %v1204_v44 = vld [vmem:[#allocation11 + $0x74] ss:$8 sps:$4 sm:$0xff]  }
  0x96   :  { %1080 = vmatprep.subr.bf16.mxu1 %v1171_v45  ;;  %v1202_v45 = vld [vmem:[#allocation11 + $0x70] ss:$8 sps:$4 sm:$0xff]  }
  0x98   :  { %469 = vmatpush1.bf16.msra.mxu0 %v1126_v14  ;;  %v256_v14 = vld [vmem:[#allocation13 + $0x1] ss:$8 sm:$0x3] }
  0x99   :  { %470 = vmatprep.subr.bf16.mxu0 %v1131_v15  ;;  %1081 = vmatpush3.bf16.msra.mxu1 %v1172_v46  ;;  %v140_v15 = vrot.slane %v1569_v54, %v139_v13  ;;  %v1207_v46 = vld [vmem:[#allocation11 + $0x84] ss:$8 sps:$4 sm:$0xff]  }
  0x9a   :  { %1082 = vmatprep.subr.bf16.mxu1 %v1173_v47  ;;  %v1205_v47 = vld [vmem:[#allocation11 + $0x80] ss:$8 sps:$4 sm:$0xff]  }
  0x9c   :  { %471 = vmatpush1.bf16.msra.mxu0 %v1129_v16  ;;  %v295_v16 = vrot.slane %v256_v14, %v1567_v53 }
  0x9d   :  { %472 = vmatprep.subr.bf16.mxu0 %v1134_v17  ;;  %1083 = vmatpush3.bf16.msra.mxu1 %v1174_v48  ;;  %v299_v17 = vrot.slane %v256_v14, %v1572_v55  ;;  %v1210_v48 = vld [vmem:[#allocation11 + $0x94] ss:$8 sps:$4 sm:$0xff]  }
  0x9e   :  { %1084 = vmatprep.subr.bf16.mxu1 %v1175_v49  ;;  %v1208_v49 = vld [vmem:[#allocation11 + $0x90] ss:$8 sps:$4 sm:$0xff]  }
  0x9f   :  { %v677_v14 = vld [vmem:[#allocation5] sm:$0xff] }
  0xa0   :  { %473 = vmatpush1.bf16.msra.mxu0 %v1132_v18 }
  0xa1   :  { %474 = vmatprep.subr.bf16.mxu0 %v1137_v19  ;;  %1085 = vmatpush3.bf16.msra.mxu1 %v1176_v50  ;;  %v1213_v50 = vld [vmem:[#allocation11 + $0xa4] ss:$8 sps:$4 sm:$0xff]  }
  0xa2   :  { %1086 = vmatprep.subr.bf16.mxu1 %v1177_v8 }
  0xa4   :  { %475 = vmatpush1.bf16.msra.mxu0 %v1135_v20 }
  0xa5   :  { %476 = vmatprep.subr.bf16.mxu0 %v1140_v21  ;;  %1087 = vmatpush3.bf16.msra.mxu1 %v1178_v9  ;;  %v505_v9 = vld [vmem:[#allocation13 + $0x2] ss:$0 sm:$0xff] }
  0xa6   :  { %1088 = vmatprep.subr.bf16.mxu1 %v1179_v10 }
  0xa8   :  { %477 = vmatpush1.bf16.msra.mxu0 %v1138_v22 }
  0xa9   :  { %478 = vmatprep.subr.bf16.mxu0 %v1143_v23  ;;  %1089 = vmatpush3.bf16.msra.mxu1 %v1180_v11 }
  0xaa   :  { %896 = vmatprep.subr.bf16.mxu1 %v1183_v12 }
  0xac   :  { %479 = vmatpush1.bf16.msra.mxu0 %v1141_v24 }
  0xad   :  { %480 = vmatprep.subr.bf16.mxu0 %v1146_v25 }
  0xb0   :  { %481 = vmatpush1.bf16.msra.mxu0 %v1144_v26 }
  0xb1   :  { %482 = vmatprep.subr.bf16.mxu0 %v1149_v27 }
  0xb4   :  { %483 = vmatpush1.bf16.msra.mxu0 %v1147_v28 }
  0xb5   :  { %484 = vmatprep.subr.bf16.mxu0 %v1152_v29  ;;  %v1181_v29 = vld [vmem:[#allocation11] ss:$8 sps:$4 sm:$0xff]  }
  0xb8   :  { %485 = vmatpush1.bf16.msra.mxu0 %v1150_v30 }
  0xb9   :  { %486 = vmatprep.subr.bf16.mxu0 %v1155_v31  ;;  %v1186_v31 = vld [vmem:[#allocation11 + $0x14] ss:$8 sps:$4 sm:$0xff]  }
  0xbc   :  { %487 = vmatpush1.bf16.msra.mxu0 %v1153_v32 }
  0xbd   :  { %488 = vmatprep.subr.bf16.mxu0 %v1158_v33  ;;  %v1184_v33 = vld [vmem:[#allocation11 + $0x10] ss:$8 sps:$4 sm:$0xff]  }
  0xc0   :  { %489 = vmatpush1.bf16.msra.mxu0 %v1156_v34  ;;  %v1189_v34 = vld [vmem:[#allocation11 + $0x24] ss:$8 sps:$4 sm:$0xff]  }
  0xc1   :  { %490 = vmatprep.subr.bf16.mxu0 %v1161_v35  ;;  %v1187_v35 = vld [vmem:[#allocation11 + $0x20] ss:$8 sps:$4 sm:$0xff]  }
  0xc4   :  { %491 = vmatpush1.bf16.msra.mxu0 %v1159_v36  ;;  %v1192_v36 = vld [vmem:[#allocation11 + $0x34] ss:$8 sps:$4 sm:$0xff]  }
  0xc5   :  { %492 = vmatprep.subr.bf16.mxu0 %v1164_v37  ;;  %v1190_v37 = vld [vmem:[#allocation11 + $0x30] ss:$8 sps:$4 sm:$0xff]  }
  0xc8   :  { %493 = vmatpush1.bf16.msra.mxu0 %v1162_v38  ;;  %v1195_v38 = vld [vmem:[#allocation11 + $0x44] ss:$8 sps:$4 sm:$0xff]  }
 0x156   :  { %v203_v58 = vpop.f32.mrb[0].mxu0 }
 0x157   :  { %v204_v59 = vadd.f32 %v203_v58, %v128_v56  ;;  %v205_v60 = vpop.f32.mrb[1].mxu0  ;;  %v1211_v56 = vld [vmem:[#allocation11 + $0xa0] ss:$8 sps:$4 sm:$0xff]   ;;  %v1214_v58 = vld [vmem:[#allocation11 + $0xb0] ss:$8 sps:$4 sm:$0xff]  }
 0x158   :  { %v206_v61 = vadd.f32 %v205_v60, %v132_v57  ;;  %v207_v62 = vpop.f32.mrb[2].mxu0  ;;  %v1216_v57 = vld [vmem:[#allocation11 + $0xb4] ss:$8 sps:$4 sm:$0xff]   ;;  %v1217_v60 = vld [vmem:[#allocation11 + $0xc0] ss:$8 sps:$4 sm:$0xff]  }
 0x159   :  { %v251_v63 = vmax.f32 %v204_v59, 0.0  ;;  %v208_v0 = vpop.f32.mrb[3].mxu0  ;;  %v1219_v59 = vld [vmem:[#allocation11 + $0xc4] ss:$8 sps:$4 sm:$0xff]   ;;  %v1222_v62 = vld [vmem:[#allocation11 + $0xd4] ss:$8 sps:$4 sm:$0xff]  }
 0x15a   :  { %v252_v1 = vmax.f32 %v206_v61, 0.0  ;;  %v135_v61 = vsub.s32 2, %v1564_v52 }
 0x15b   :  { %v257_v3 = vpack.c.bf16 %v251_v63, %v251_v63  ;;  %v1220_v63 = vld [vmem:[#allocation11 + $0xd0] ss:$8 sps:$4 sm:$0xff]  }
 0x15c   :  { %v258_v2 = vpack.c.bf16 %v252_v1, %v252_v1  ;;  %v136_v0 = vrot.slane %v1569_v54, %v135_v61  ;;  %v1225_v1 = vld [vmem:[#allocation11 + $0xe4] ss:$8 sps:$4 sm:$0xff]  }
 0x15e   :  { %494 = vmatprep.mubr.bf16.mxu0 %v258_v2  ;;  %v1578_v4 = vpop.f32.mrb[4].mxu0  ;;  %v1223_v2 = vld [vmem:[#allocation11 + $0xe0] ss:$8 sps:$4 sm:$0xff]  }
 0x15f   :  { %495 = vmatmul.mubr.bf16.vlgmr.msra.gmra.mrb[8].mxu0 %v257_v3  ;;  %v246_v5 = vpop.f32.mrb[5].mxu0  ;;  %v245_v3 = vadd.f32 %v1578_v4, %v136_v0 }
 0x160   :  { %v248_v6 = vpop.f32.mrb[6].mxu0  ;;  %v247_v18 = vadd.f32 %v246_v5, %v140_v15  ;;  %v1228_v5 = vld [vmem:[#allocation11 + $0xf4] ss:$8 sps:$4 sm:$0xff]   ;;  %v678_v15 = vld [vmem:[#allocation13 + $0x1a] ss:$0 sm:$0xff] }
 0x161   :  { %v249_v7 = vpop.f32.mrb[7].mxu0  ;;  %v1226_v6 = vld [vmem:[#allocation11 + $0xf0] ss:$8 sps:$4 sm:$0xff]   ;;  %v679_v4 = vmul.f32 %v678_v15, %v677_v14 }
 0x162   :  { %v254_v26 = vmax.f32 %v247_v18, 0.0  ;;  %v253_v7 = vmax.f32 %v245_v3, 0.0 }
 0x164   :  { %v692_v32 = vpack.c.bf16 %v254_v26, %v254_v26  ;;  %v691_v52 = vpack.c.bf16 %v253_v7, %v253_v7  ;;  %v940_v26 = vld [vmem:[#allocation13 + $0x3] ss:$8 sm:$0x3] }
 0x232   :  { %v496_v19 = vpop.f32.mrb[8].mxu0 }
 0x233   :  { %v497_v20 = vadd.f32 %v496_v19, %v295_v16  ;;  %v498_v21 = vpop.f32.mrb[9].mxu0  ;;  %v683_v19 = vld [vmem:[#allocation13 + $0x12] ss:$0 sm:$0xff] }
 0x234   :  { %v499_v22 = vadd.f32 %v498_v21, %v299_v17  ;;  %v500_v23 = vpop.f32.mrb[10].mxu0  ;;  %v682_v21 = vld [vmem:[#allocation13 + $0xa] ss:$0 sm:$0xff] }
 0x235   :  { %v503_v24 = vmax.f32 %v497_v20, 0.0  ;;  %v501_v25 = vpop.f32.mrb[11].mxu0 }
 0x236   :  { %v504_v27 = vmax.f32 %v499_v22, 0.0 }
 0x237   :  { %v506_v30 = vpack.c.bf16 %v503_v24, %v503_v24  ;;  %v690_v24 = vld [vmem:[#allocation13 + $0x11] ss:$8 sm:$0x3] }
 0x238   :  { %v507_v28 = vpack.c.bf16 %v504_v27, %v504_v27  ;;  %v729_v25 = vrot.slane %v690_v24, %v1567_v53  ;;  %v733_v27 = vrot.slane %v690_v24, %v1572_v55 }
 0x23a   :  { %668 = vmatprep.mubr.bf16.mxu1 %v507_v28 }
 0x23b   :  { %669 = vmatmul.mubr.bf16.vlgmr.msra.gmra.mrb[0].mxu1 %v506_v30  ;;  %v945_v30 = vrot.slane %v940_v26, %v1567_v53 }
 0x23c   :  { %897 = vmatpush1.bf16.msra.mxu1 %v1181_v29  ;;  %928 = vmatprep.mubr.bf16.mxu1 %v692_v32 }
 0x23d   :  { %898 = vmatprep.subr.bf16.mxu1 %v1186_v31 }
 0x240   :  { %899 = vmatpush1.bf16.msra.mxu1 %v1184_v33  ;;  %v949_v33 = vrot.slane %v940_v26, %v1572_v55 }
 0x241   :  { %900 = vmatprep.subr.bf16.mxu1 %v1189_v34 }
 0x244   :  { %901 = vmatpush1.bf16.msra.mxu1 %v1187_v35 }
 0x245   :  { %902 = vmatprep.subr.bf16.mxu1 %v1192_v36 }
 0x248   :  { %903 = vmatpush1.bf16.msra.mxu1 %v1190_v37 }
 0x249   :  { %904 = vmatprep.subr.bf16.mxu1 %v1195_v38 }
 0x24c   :  { %905 = vmatpush1.bf16.msra.mxu1 %v1193_v39 }
 0x24d   :  { %906 = vmatprep.subr.bf16.mxu1 %v1198_v40 }
 0x250   :  { %907 = vmatpush1.bf16.msra.mxu1 %v1196_v41  ;;  %v958_v41 = vand.u32 127, %v125_v51 }
 0x251   :  { %908 = vmatprep.subr.bf16.mxu1 %v1201_v42 }
 0x252   :  { %vm961_vm1 = vcmp.eq.s32.totalorder %v958_v41, 8  ;;  %vm959_vm2 = vcmp.lt.s32.totalorder %v958_v41, 8  ;;  %vm964_vm3 = vcmp.eq.s32.totalorder %v958_v41, 9 }
 0x254   :  { %909 = vmatpush1.bf16.msra.mxu1 %v1199_v43 }
 0x255   :  { %910 = vmatprep.subr.bf16.mxu1 %v1204_v44 }
 0x258   :  { %911 = vmatpush1.bf16.msra.mxu1 %v1202_v45 }
 0x259   :  { %912 = vmatprep.subr.bf16.mxu1 %v1207_v46  ;;  %v967_v46 = vld [vmem:[#allocation13 + $0x13] ss:$0 sm:$0xff] }
 0x25c   :  { %913 = vmatpush1.bf16.msra.mxu1 %v1205_v47 }
 0x25d   :  { %914 = vmatprep.subr.bf16.mxu1 %v1210_v48 }
 0x260   :  { %915 = vmatpush1.bf16.msra.mxu1 %v1208_v49 }
 0x261   :  { %916 = vmatprep.subr.bf16.mxu1 %v1213_v50 }
 0x264   :  { %917 = vmatpush1.bf16.msra.mxu1 %v1211_v56 }
 0x265   :  { %918 = vmatprep.subr.bf16.mxu1 %v1216_v57 }
 0x268   :  { %919 = vmatpush1.bf16.msra.mxu1 %v1214_v58 }
 0x269   :  { %920 = vmatprep.subr.bf16.mxu1 %v1219_v59 }
 0x26c   :  { %921 = vmatpush1.bf16.msra.mxu1 %v1217_v60 }
 0x26d   :  { %922 = vmatprep.subr.bf16.mxu1 %v1222_v62 }
 0x270   :  { %923 = vmatpush1.bf16.msra.mxu1 %v1220_v63 }
 0x271   :  { %924 = vmatprep.subr.bf16.mxu1 %v1225_v1 }
 0x274   :  { %925 = vmatpush1.bf16.msra.mxu1 %v1223_v2 }
 0x275   :  { %926 = vmatprep.subr.bf16.mxu1 %v1228_v5 }
 0x278   :  { %927 = vmatpush1.bf16.msra.mxu1 %v1226_v6 }
 0x27b   :  { %929 = vmatmul.mubr.bf16.vlgmr.msra.gmra.mrb[4].mxu1 %v691_v52 }
 0x30e   :  { %v1090_v8 = vpop.f32.mrb[0].mxu1 }
 0x30f   :  { %v1091_v10 = vpop.f32.mrb[1].mxu1 }
 0x310   :  { %v1092_v11 = vadd.f32 %v1091_v10, %v1090_v8  ;;  %v1093_v54 = vpop.f32.mrb[2].mxu1 }
 0x311   :  { %v1094_v12 = vpop.f32.mrb[3].mxu1 }
 0x312   :  { %v671_v13 = vadd.f32 %v1092_v11, %v505_v9 }
 0x314   :  { %1229 = vtanh.f32 %v671_v13 }
 0x31e   :  { %v1230_v16 = vpop.eup %1229 }
 0x31f   :  { %v680_v17 = vadd.f32 %v1230_v16, %v679_v4 }
 0x321   :  { %v681_v18 = vsub.f32 %v680_v17, %v1230_v16  ;;  %v960_v53 = vsel %vm959_vm2, %v680_v17, 0.0 }
 0x323   :  { %v684_v20 = vmul.f32 %v681_v18, %v681_v18 }
 0x325   :  { %v685_v22 = vmul.f32 %v684_v20, %v683_v19 }
 0x327   :  { %v686_v23 = vadd.f32 %v685_v22, %v682_v21 }
 0x329   :  { %687 = vadd.xlane.f32.xlu0 %v686_v23 }
 0x34e   :  { %v930_v28 = vpop.f32.mrb[4].mxu1 }
 0x34f   :  { %v931_v29 = vadd.f32 %v930_v28, %v729_v25  ;;  %v932_v31 = vpop.f32.mrb[5].mxu1 }
 0x350   :  { %v933_v32 = vadd.f32 %v932_v31, %v733_v27  ;;  %v934_v34 = vpop.f32.mrb[6].mxu1 }
 0x351   :  { %v937_v35 = vmax.f32 %v931_v29, 0.0  ;;  %v935_v36 = vpop.f32.mrb[7].mxu1 }
 0x352   :  { %v938_v37 = vmax.f32 %v933_v32, 0.0 }
 0x353   :  { %v952_v38 = vmul.f32 %v945_v30, %v937_v35 }
 0x354   :  { %v953_v39 = vmul.f32 %v949_v33, %v938_v37 }
 0x356   :  { %v954_v40 = vadd.f32 %v953_v39, %v952_v38 }
 0x358   :  { %955 = vadd.xlane.f32.xlu0 %v954_v40 }
 0x3b6   :  { %v688_v42 = vpop.xlane.xlu0 %687 }
 0x3b7   :  { %v962_v43 = vsel %vm961_vm1, %v688_v42, 0.0 }
 0x3b8   :  { %v963_v44 = vadd.f32 %v962_v43, %v960_v53 }
 0x3e5   :  { %v956_v45 = vpop.xlane.xlu0 %955 }
 0x3e6   :  { %v965_v55 = vsel %vm964_vm3, %v956_v45, 0.0 }
 0x3e7   :  { %v966_v47 = vadd.f32 %v965_v55, %v963_v44 }
 0x3e9   :  { %v968_v48 = vadd.f32 %v967_v46, %v966_v47 }
 0x3eb   :  { %969 = vst [vmem:[#allocation14] sm:$0xff] %v968_v48 }
 0x3ec   :  { %1396 = shalt.err (!%p1393_p4)
}
 0x3ed   :  { %s1397_s27 = scalar_lea.hbm %s1611_s7, 128 }
 0x3ee   :  { %p1398_p5 = scmp.ne.s32.totalorder %s1611_s7, %s1397_s27  ;;  %p1401_p6 = scmp.lt.u32.totalorder %s1397_s27, %s1611_s7 }
 0x3f0   :  { %p1403_p7 = pnand %p1401_p6, %p1398_p5 }
 0x3f2   :  { %1406 = shalt.err (!%p1403_p7)
}
 0x3f3   :  { %979 = dma.vmem_to_hbm [thread:$0]  %s977_s30, 128, %s1611_s7, [#allocation4]  }
 0x3f4   :  { %1415 = dma.done.wait [#allocation4], 128  }
 0x3f5   :  { %1416 = vsyncadd [#allocation4], 4294967168 }
 0x3f6   :  { %983 = vsyncpa [#allocation3], 1 }
 0x3f7   :  { %984 = vsyncpa [#allocation6], 1 }
 0x3f8   :  { %985 = vsyncpa [#allocation9], 1 }
 0x3f9   :  { %986 = vsyncpa [#allocation12], 1 }
 0x3fa   :  { %987 = vsyncpa [#allocation4], 1 }

</bundles_post_ra>
